<compile_context>
chip_gen: v7x
topology: tpu7x:2x2x1
jax: 0.10.0
libtpu: 0.0.40
codegen_flags: <defaults>
</compile_context>

<pallas_src>
import math
import numpy as np
import jax
import jax.numpy as jnp
from jax import lax
from jax.experimental import pallas as pl
from jax.experimental.pallas import tpu as pltpu


def _cov2_kernel(seq_ref, idx_ref, p_ref, out_ref):
    S = seq_ref.shape[0]

    seq = seq_ref[...].astype(jnp.float32)          # (S, D)
    q_row = idx_ref[0:1, :]                         # (1, S)  qvs_idx, lane-dense
    s_row = idx_ref[1:2, :]                         # (1, S)  sum_idx, lane-dense

    # Gram matrix on the MXU, f32 accumulate (symmetric: gram[a,b] = <seq_a, seq_b>).
    gram = lax.dot_general(seq, seq, (((1,), (1,)), ((), ())),
                           preferred_element_type=jnp.float32)        # (S, S)

    # Diagonal mask: extracts row norms from the gram and column forms of the index
    # vectors with pure elementwise + reduction ops (no wrapper launch, no transpose).
    rows = lax.broadcasted_iota(jnp.int32, (S, S), 0)
    cols = lax.broadcasted_iota(jnp.int32, (S, S), 1)
    eye = (rows == cols).astype(jnp.float32)                          # (S, S)
    n_col = jnp.sum(gram * eye, axis=1, keepdims=True)                # (S, 1) ||seq_a||^2
    n_row = jnp.sum(gram * eye, axis=0, keepdims=True)                # (1, S) ||seq_b||^2
    s_col = jnp.sum(s_row * eye, axis=1, keepdims=True)               # (S, 1) sum_idx col

    # Transposed distances: dist_t[j, i] = || sum_idx[j]*seq_j - qvs_idx[i]*seq_i ||
    d2 = (s_col * s_col) * n_col + (q_row * q_row) * n_row \
        - 2.0 * (s_col * q_row) * gram
    dist_t = jnp.sqrt(jnp.maximum(d2, 0.0))                           # (S, S) == dist.T

    # norm = mean over all S*S entries.
    norm = jnp.sum(jnp.sum(dist_t, axis=0, keepdims=True),
                   axis=1, keepdims=True) * (1.0 / float(S * S))      # (1, 1)

    # Static-shape masked column mean (replaces the host nonzero() gather):
    # simcov[i] = mean over rows j of dist_t with sum_idx[j] != 0, lane-dense over i.
    mask_col = (s_col != 0.0).astype(jnp.float32)                     # (S, 1)
    count = jnp.sum(mask_col, axis=0, keepdims=True)                  # (1, 1)
    inv_count = pl.reciprocal(count, approx=True)                     # EUP slot
    simcov = jnp.sum(dist_t * mask_col, axis=0, keepdims=True) * inv_count   # (1, S)

    simcov = jnp.minimum(simcov, norm)        # simcov[simcov > norm] = norm
    inv_norm = pl.reciprocal(norm, approx=True)                       # EUP slot
    simcov = 1.0 - simcov * inv_norm

    w = p_ref[0]                              # SMEM scalars: 1x1 affine fused here
    b = p_ref[1]
    out_ref[...] = simcov * w + b             # (1, S) lane-dense row


def cov2_pallas(seq, idx, params):
    S, D = seq.shape
    return pl.pallas_call(
        _cov2_kernel,
        out_shape=jax.ShapeDtypeStruct((1, S), jnp.float32),
        in_specs=[
            pl.BlockSpec(memory_space=pltpu.MemorySpace.VMEM),   # seq    (S, D)
            pl.BlockSpec(memory_space=pltpu.MemorySpace.VMEM),   # idx    (2, S)
            pl.BlockSpec(memory_space=pltpu.MemorySpace.SMEM),   # params (2,)
        ],
        out_specs=pl.BlockSpec(memory_space=pltpu.MemorySpace.VMEM),
    )(seq, idx, params)


@jax.jit
def cov2_forward(seq, qvs_idx, sum_idx, weight, bias):
    """Mirrors Cov_2.forward(seq, qvs_idx, sum_idx); fully on-device / jittable."""
    seq = seq.astype(jnp.float32)
    S, _ = seq.shape
    idx = jnp.concatenate(
        [qvs_idx.reshape(1, S).astype(jnp.float32),
         sum_idx.reshape(1, S).astype(jnp.float32)], axis=0)          # (2, S)
    params = jnp.concatenate(
        [weight.reshape(1).astype(jnp.float32),
         bias.reshape(1).astype(jnp.float32)], axis=0)                # (2,)
    out_row = cov2_pallas(seq, idx, params)                           # (1, S)
    return out_row.reshape(S, 1)                                      # (S, 1)


def _reference_numpy(seq, qvs_idx, sum_idx, weight, bias):
    """Host numpy transcription of the PyTorch forward (test-only)."""
    seq = np.asarray(seq, dtype=np.float64)
    qvs = np.asarray(qvs_idx, dtype=np.float64)
    sidx = np.asarray(sum_idx, dtype=np.float64)
    inseqS = seq * sidx
    inseqQ = seq * qvs
    dist = np.linalg.norm(inseqQ[:, None, :] - inseqS[None, :, :], axis=2)
    norm = dist.mean()
    cols = np.nonzero(sidx.squeeze())[0]
    sub = dist[:, cols]
    if sub.ndim == 1:
        sub = sub[:, None]
    simcov = sub.mean(axis=1, keepdims=True)
    simcov = np.minimum(simcov, norm)
    simcov = 1.0 - simcov / norm
    return simcov @ np.asarray(weight, dtype=np.float64) + np.asarray(bias, dtype=np.float64)


if __name__ == "__main__":
    key = jax.random.PRNGKey(0)
    k_seq, k_w, k_b = jax.random.split(key, 3)

    SEQLEN, FEAT = 8, 32

    seq = jax.random.normal(k_seq, (SEQLEN, FEAT), dtype=jnp.float32)
    # Non-binary index values exercise "scale by value, select by nonzero".
    qvs_idx = jnp.array([[0.], [10.], [0.], [0.5], [0.], [0.], [1.], [0.]],
                        dtype=jnp.float32)
    sum_idx = jnp.array([[1.], [0.], [0.5], [1.], [0.], [2.], [1.], [0.]],
                        dtype=jnp.float32)

    # Parameter init mirroring layers.reset_parameters():
    # stdv = 1/sqrt(out_dim) = 1.0, weight/bias ~ U(0, stdv), shapes (1,1)/(1,)
    stdv = 1.0 / math.sqrt(1)
    weight = jax.random.uniform(k_w, (1, 1), minval=0.0, maxval=stdv,
                                dtype=jnp.float32)
    bias = jax.random.uniform(k_b, (1,), minval=0.0, maxval=stdv,
                              dtype=jnp.float32)

    out = cov2_forward(seq, qvs_idx, sum_idx, weight, bias)
    out = jax.block_until_ready(out)

    assert out.shape == (SEQLEN, 1), out.shape
    assert bool(jnp.all(jnp.isfinite(out)))

    ref = _reference_numpy(seq, qvs_idx, sum_idx, weight, bias)
    np.testing.assert_allclose(np.asarray(out), ref, rtol=1e-2, atol=1e-2)

    print("KERNEL_OK")
</pallas_src>

<mosaic_0001>
module attributes {stable_mosaic.version = 11 : i64} {
  func.func @_cov2_kernel(%arg0: memref<8x32xf32, #tpu.memory_space<vmem>>, %arg1: memref<2x8xf32, #tpu.memory_space<vmem>>, %arg2: memref<2xf32, #tpu.memory_space<smem>>, %arg3: memref<1x8xf32, #tpu.memory_space<vmem>>) attributes {dimension_semantics = [], scalar_prefetch = 0 : i64, scratch_operands = 0 : i64, tpu.core_type = #tpu.core_type<tc>} {
    %c0 = arith.constant 0 : index
    %c0_0 = arith.constant 0 : index
    %0 = vector.load %arg0[%c0, %c0_0] : memref<8x32xf32, #tpu.memory_space<vmem>>, vector<8x32xf32>
    %c0_1 = arith.constant 0 : index
    %c0_2 = arith.constant 0 : index
    %1 = vector.load %arg1[%c0_1, %c0_2] : memref<2x8xf32, #tpu.memory_space<vmem>>, vector<1x8xf32>
    %c1 = arith.constant 1 : index
    %c0_3 = arith.constant 0 : index
    %2 = vector.load %arg1[%c1, %c0_3] : memref<2x8xf32, #tpu.memory_space<vmem>>, vector<1x8xf32>
    %cst = arith.constant dense<0.000000e+00> : vector<8x8xf32>
    %3 = tpu.matmul %0, %0, %cst {dimension_numbers = #tpu.dot_dimension_numbers<[1], [1], [0], [0], [0, 0, 1, 0], [], []>} : vector<8x32xf32>, vector<8x32xf32>, vector<8x8xf32> -> vector<8x8xf32>
    %4 = tpu.iota {dimensions = array<i32: 0>} : vector<8x8xi32>
    %5 = tpu.iota {dimensions = array<i32: 1>} : vector<8x8xi32>
    %6 = arith.cmpi eq, %4, %5 : vector<8x8xi32>
    %7 = arith.extui %6 : vector<8x8xi1> to vector<8x8xi32>
    %8 = arith.sitofp %7 : vector<8x8xi32> to vector<8x8xf32>
    %9 = arith.mulf %3, %8 : vector<8x8xf32>
    %cst_4 = arith.constant dense<0.000000e+00> : vector<8xf32>
    %10 = vector.multi_reduction <add>, %9, %cst_4 [1] : vector<8x8xf32> to vector<8xf32>
    %11 = vector.shape_cast %10 : vector<8xf32> to vector<8x1xf32>
    %12 = arith.mulf %3, %8 : vector<8x8xf32>
    %cst_5 = arith.constant dense<0.000000e+00> : vector<8xf32>
    %13 = vector.multi_reduction <add>, %12, %cst_5 [0] : vector<8x8xf32> to vector<8xf32>
    %14 = vector.shape_cast %13 : vector<8xf32> to vector<1x8xf32>
    %15 = vector.broadcast %2 : vector<1x8xf32> to vector<8x8xf32>
    %16 = arith.mulf %15, %8 : vector<8x8xf32>
    %cst_6 = arith.constant dense<0.000000e+00> : vector<8xf32>
    %17 = vector.multi_reduction <add>, %16, %cst_6 [1] : vector<8x8xf32> to vector<8xf32>
    %18 = vector.shape_cast %17 : vector<8xf32> to vector<8x1xf32>
    %19 = arith.mulf %18, %18 : vector<8x1xf32>
    %20 = arith.mulf %19, %11 : vector<8x1xf32>
    %21 = arith.mulf %1, %1 : vector<1x8xf32>
    %22 = arith.mulf %21, %14 : vector<1x8xf32>
    %23 = vector.broadcast %20 : vector<8x1xf32> to vector<8x8xf32>
    %24 = vector.broadcast %22 : vector<1x8xf32> to vector<8x8xf32>
    %25 = arith.addf %23, %24 : vector<8x8xf32>
    %26 = vector.broadcast %18 : vector<8x1xf32> to vector<8x8xf32>
    %27 = vector.broadcast %1 : vector<1x8xf32> to vector<8x8xf32>
    %28 = arith.mulf %26, %27 : vector<8x8xf32>
    %cst_7 = arith.constant 2.000000e+00 : f32
    %29 = vector.broadcast %cst_7 : f32 to vector<8x8xf32>
    %30 = arith.mulf %29, %28 : vector<8x8xf32>
    %31 = arith.mulf %30, %3 : vector<8x8xf32>
    %32 = arith.subf %25, %31 : vector<8x8xf32>
    %cst_8 = arith.constant 0.000000e+00 : f32
    %33 = vector.broadcast %cst_8 : f32 to vector<8x8xf32>
    %34 = arith.maximumf %32, %33 : vector<8x8xf32>
    %35 = math.sqrt %34 : vector<8x8xf32>
    %cst_9 = arith.constant dense<0.000000e+00> : vector<8xf32>
    %36 = vector.multi_reduction <add>, %35, %cst_9 [0] : vector<8x8xf32> to vector<8xf32>
    %37 = vector.shape_cast %36 : vector<8xf32> to vector<1x8xf32>
    %cst_10 = arith.constant dense<0.000000e+00> : vector<1xf32>
    %38 = vector.multi_reduction <add>, %37, %cst_10 [1] : vector<1x8xf32> to vector<1xf32>
    %39 = vector.shape_cast %38 : vector<1xf32> to vector<1x1xf32>
    %cst_11 = arith.constant 1.562500e-02 : f32
    %40 = vector.broadcast %cst_11 : f32 to vector<1x1xf32>
    %41 = arith.mulf %39, %40 : vector<1x1xf32>
    %cst_12 = arith.constant 0.000000e+00 : f32
    %42 = vector.broadcast %cst_12 : f32 to vector<8x1xf32>
    %43 = arith.cmpf one, %18, %42 : vector<8x1xf32>
    %44 = arith.extui %43 : vector<8x1xi1> to vector<8x1xi32>
    %45 = arith.sitofp %44 : vector<8x1xi32> to vector<8x1xf32>
    %cst_13 = arith.constant dense<0.000000e+00> : vector<1xf32>
    %46 = vector.multi_reduction <add>, %45, %cst_13 [0] : vector<8x1xf32> to vector<1xf32>
    %47 = vector.shape_cast %46 : vector<1xf32> to vector<1x1xf32>
    %48 = tpu.reciprocal %47 {approx = true} : vector<1x1xf32> -> vector<1x1xf32>
    %49 = vector.broadcast %45 : vector<8x1xf32> to vector<8x8xf32>
    %50 = arith.mulf %35, %49 : vector<8x8xf32>
    %cst_14 = arith.constant dense<0.000000e+00> : vector<8xf32>
    %51 = vector.multi_reduction <add>, %50, %cst_14 [0] : vector<8x8xf32> to vector<8xf32>
    %52 = vector.shape_cast %51 : vector<8xf32> to vector<1x8xf32>
    %53 = vector.broadcast %48 : vector<1x1xf32> to vector<1x8xf32>
    %54 = arith.mulf %52, %53 : vector<1x8xf32>
    %55 = vector.broadcast %41 : vector<1x1xf32> to vector<1x8xf32>
    %56 = arith.minimumf %54, %55 : vector<1x8xf32>
    %57 = tpu.reciprocal %41 {approx = true} : vector<1x1xf32> -> vector<1x1xf32>
    %58 = vector.broadcast %57 : vector<1x1xf32> to vector<1x8xf32>
    %59 = arith.mulf %56, %58 : vector<1x8xf32>
    %cst_15 = arith.constant 1.000000e+00 : f32
    %60 = vector.broadcast %cst_15 : f32 to vector<1x8xf32>
    %61 = arith.subf %60, %59 : vector<1x8xf32>
    %c0_16 = arith.constant 0 : index
    %62 = memref.load %arg2[%c0_16] : memref<2xf32, #tpu.memory_space<smem>>
    %c1_17 = arith.constant 1 : index
    %63 = memref.load %arg2[%c1_17] : memref<2xf32, #tpu.memory_space<smem>>
    %64 = vector.broadcast %62 : f32 to vector<1x8xf32>
    %65 = arith.mulf %61, %64 : vector<1x8xf32>
    %66 = vector.broadcast %63 : f32 to vector<1x8xf32>
    %67 = arith.addf %65, %66 : vector<1x8xf32>
    %c0_18 = arith.constant 0 : index
    %c0_19 = arith.constant 0 : index
    %68 = vector.load %arg3[%c0_18, %c0_19] : memref<1x8xf32, #tpu.memory_space<vmem>>, vector<1x8xf32>
    tpu.vector_store %arg3[%c0_18, %c0_19], %67 {strides = array<i32>} : memref<1x8xf32, #tpu.memory_space<vmem>>, vector<1x8xf32>,
    return
  }
}

</mosaic_0001>

<bundles_post_ra>
// kernel: cov2_forward.1
= control target key start
LH: loop header
LB: loop body
LE: loop exit
PB: predicated region body
PF: predicated region fallthrough
CT: control target
= control target key end

     0   :  { %8 = vsyncpa [#allocation4], 0  ;;  %s327_s0 = inlined_call_operand.vmem [shape: f32[8,32], index: 0, kind: input, shape index: {}]   ;;  %s328_s1 = inlined_call_operand.vmem [shape: f32[2,8], index: 1, kind: input, shape index: {}]   ;;  %s329_s2 = inlined_call_operand.vmem [shape: f32[2], index: 2, kind: input, shape index: {}]   ;;  %s330_s3 = inlined_call_operand.hbm [shape: f32[1,8], index: 3, kind: output, shape index: {}]  }
   0x1   :  { %9 = vsyncpa [#allocation3], 0  ;;  %s20_s14 = sshll.u32 %s329_s2, 4  ;;  %s21_s14 = int_to_ptr.vmem [resolvable:$true] %s20_s14 }
   0x2   :  { %s236_s15 = scalar_lea.vmem %s21_s14, 16  ;;  %p241_p1 = scmp.lt.s32.totalorder %s21_s14, %s21_s14 }
   0x3   :  { %p237_p0 = scmp.ne.s32.totalorder %s21_s14, %s236_s15  ;;  %p242_p2 = scmp.lt.s32.totalorder %s236_s15, %s236_s15 }
   0x5   :  { %p243_p3 = por %p242_p2, %p241_p1 }
   0x7   :  { %p244_p4 = pnand %p243_p3, %p237_p0 }
   0x9   :  { %247 = shalt.err (!%p244_p4)
}
   0xa   :  { %s274_s16 = smov [#allocation2]  }
   0xb   :  { %23 = dma.vmem_to_smem %s21_s14, 16, %s274_s16, [#allocation4]  }
   0xc   :  { %270 = dma.done.wait [#allocation4], 16  }
   0xd   :  { %271 = vsyncadd [#allocation4], 4294967280 }
   0xe   :  { %27 = sfence }
   0xf   :  { %v28_v0 = vld [vmem:[%s327_s0] sm:$0xff]  ;;  %vm31_vm0 = vcmask 261120   ;;  %v105_v1 = vlaneseq  ;;  %v275_v2 = vmov 0.0   ;;  %vm276_vm1 = vmmov 0   ;;  %s218_s21 = sld [smem:[#allocation2 + $0x1]]  ;;  %s277_s22 = smov [#allocation5]  }
  0x10   :  { %221 = vmatprep.subr.mxu0 %v275_v2  ;;  %223 = vmatprep.mubr.msk.f32.mxu0 %vm276_vm1, %v275_v2  ;;  %v216_v5 = vld [vmem:[%s328_s1 + $0x1] ss:$0 sm:$0xff]  ;;  %vm113_vm3 = vcmask 64512   ;;  %v29_v10 = vld [vmem:[%s328_s1] sm:$0x1]  ;;  %s190_s1 = sld [smem:[#allocation2]] }
  0x11   :  { %222 = vmatpush3.xpose.msk.msra.mxu0 %vm31_vm0, %v28_v0  ;;  %v106_v3 = vshrl.u32 %v105_v1, 7  ;;  %v108_v4 = vand.u32 127, %v105_v1  ;;  %v133_v24 = vmul.f32 %v29_v10, %v29_v10  ;;  %s204_s23 = sshll.u32 %s277_s22, 4  ;;  %vm196_vm7 = vcmask 57344   ;;  %s205_s23 = int_to_ptr.vmem [resolvable:$true] %s204_s23 }
  0x12   :  { %s248_s24 = scalar_lea.vmem %s205_s23, 16  ;;  %s252_s25 = scalar_lea.vmem %s205_s23, 32 }
  0x13   :  { %vm109_vm2 = vcmp.eq.s32.totalorder %v106_v3, %v108_v4  ;;  %v137_v9 = vsub.s32 0, %v106_v3  ;;  %p249_p5 = scmp.ne.s32.totalorder %s205_s23, %s248_s24  ;;  %p253_p6 = scmp.lt.s32.totalorder %s205_s23, %s205_s23 }
  0x14   :  { %224 = vmatmul.mubr.msk.f32.vlgmr.msra.gmra.mrb[0].mxu0 %vm31_vm0, %v28_v0  ;;  %v215_v6 = vsel %vm109_vm2, 1.0, %v275_v2  ;;  %p254_p7 = scmp.lt.s32.totalorder %s252_s25, %s248_s24 }
  0x15   :  { %v127_v7 = vmul.f32 %v216_v5, %v215_v6  ;;  %v143_v11 = vrot.slane %v29_v10, %v137_v9 }
  0x16   :  { %p255_p8 = por %p254_p7, %p253_p6 }
  0x17   :  { %v128_v8 = vsel %vm113_vm3, %v127_v7, 0.0 }
  0x18   :  { %129 = vadd.xlane.f32.xlu0 %v128_v8  ;;  %v194_v8 = vstv %s218_s21  ;;  %p256_p9 = pnand %p255_p8, %p249_p5 }
  0xa5   :  { %v130_v12 = vpop.xlane.xlu0 %129 }
  0xa6   :  { %v144_v13 = vmul.f32 %v143_v11, %v130_v12  ;;  %v131_v29 = vmul.f32 %v130_v12, %v130_v12  ;;  %vm167_vm6 = vcmp.ne.f32.partialorder %v130_v12, 0.0 }
  0xa7   :  { %v217_v48 = vsel %vm167_vm6, 1.0, %v275_v2 }
  0xa8   :  { %v145_v14 = vmul.f32 2.0, %v144_v13  ;;  %v170_v49 = vrot.slane %v217_v48, 4 }
  0xaa   :  { %v171_v50 = vadd.f32 %v217_v48, %v170_v49 }
  0xac   :  { %v172_v52 = vrot.slane %v171_v50, 2 }
  0xae   :  { %v173_v55 = vadd.f32 %v172_v52, %v171_v50 }
  0xb0   :  { %v174_v57 = vrot.slane %v173_v55, 1 }
  0xb2   :  { %v175_v59 = vadd.f32 %v174_v57, %v173_v55 }
  0xe7   :  { %v101_v15 = vpop.f32.mrb[0].mxu0 }
  0xe8   :  { %v112_v16 = vmul.f32 %v215_v6, %v101_v15  ;;  %v146_v17 = vmul.f32 %v145_v14, %v101_v15  ;;  %v225_v18 = vpop.f32.mrb[1].mxu0  ;;  %v192_v6 = vstv %s190_s1 }
  0xea   :  { %v114_v19 = vsel %vm113_vm3, %v112_v16, 0.0 }
  0xeb   :  { %115 = vadd.xlane.f32.xlu0 %v114_v19  ;;  %v117_v20 = vrot.slane %v114_v19, 4 }
  0xed   :  { %v118_v21 = vadd.f32 %v117_v20, %v114_v19 }
  0xef   :  { %v119_v22 = vrot.slane %v118_v21, 2 }
  0xf1   :  { %v120_v23 = vadd.f32 %v119_v22, %v118_v21 }
  0xf3   :  { %v121_v25 = vrot.slane %v120_v23, 1 }
  0xf5   :  { %v122_v26 = vadd.f32 %v121_v25, %v120_v23 }
  0xf7   :  { %v134_v27 = vmul.f32 %v133_v24, %v122_v26 }
  0xf9   :  { %v138_v28 = vrot.slane %v134_v27, %v137_v9 }
 0x178   :  { %v116_v30 = vpop.xlane.xlu0 %115 }
 0x179   :  { %v132_v31 = vmul.f32 %v131_v29, %v116_v30 }
 0x17b   :  { %v139_v32 = vadd.f32 %v138_v28, %v132_v31 }
 0x17d   :  { %v147_v33 = vsub.f32 %v139_v32, %v146_v17 }
 0x17f   :  { %v148_v34 = vmax.f32 %v147_v33, 0.0 }
 0x181   :  { %230 = vrsqrt.f32 %v148_v34  ;;  %vm151_vm4 = vcmp.eq.f32.partialorder %v148_v34, inf  ;;  %v154_v37 = vand.u32 2147483648, %v148_v34  ;;  %vm153_vm5 = vcmp.eq.f32.partialorder %v148_v34, 0.0 }
 0x182   :  { %232 = vrcp.f32 %v175_v59 }
 0x18b   :  { %v231_v35 = vpop.eup %230 }
 0x18c   :  { %v150_v36 = vmul.f32 %v231_v35, %v148_v34  ;;  %v233_v1 = vpop.eup %232 }
 0x18e   :  { %v152_v38 = vsel %vm151_vm4, %v148_v34, %v150_v36 }
 0x18f   :  { %v155_v39 = vsel %vm153_vm5, %v154_v37, %v152_v38 }
 0x190   :  { %v156_v40 = vsel %vm113_vm3, %v155_v39, 0.0  ;;  %v177_v51 = vmul.f32 %v217_v48, %v155_v39 }
 0x191   :  { %v157_v41 = vrot.slane %v156_v40, 4 }
 0x192   :  { %v178_v53 = vsel %vm113_vm3, %v177_v51, 0.0 }
 0x193   :  { %v158_v42 = vadd.f32 %v157_v41, %v156_v40  ;;  %v179_v54 = vrot.slane %v178_v53, 4 }
 0x195   :  { %v159_v43 = vrot.slane %v158_v42, 2  ;;  %v180_v56 = vadd.f32 %v179_v54, %v178_v53 }
 0x197   :  { %v160_v44 = vadd.f32 %v159_v43, %v158_v42  ;;  %v181_v58 = vrot.slane %v180_v56, 2 }
 0x199   :  { %v161_v45 = vrot.slane %v160_v44, 1  ;;  %v182_v60 = vadd.f32 %v181_v58, %v180_v56 }
 0x19b   :  { %v162_v46 = vadd.f32 %v161_v45, %v160_v44  ;;  %v183_v63 = vrot.slane %v182_v60, 1 }
 0x19d   :  { %v163_v47 = vsel %vm113_vm3, %v162_v46, 0.0  ;;  %v184_v0 = vadd.f32 %v183_v63, %v182_v60 }
 0x19e   :  { %164 = vadd.xlane.f32.xlu1 %v163_v47 }
 0x19f   :  { %v185_v2 = vmul.f32 %v233_v1, %v184_v0 }
 0x22b   :  { %v165_v61 = vpop.xlane.xlu1 %164 }
 0x22c   :  { %v166_v62 = vmul.f32 0.015625, %v165_v61 }
 0x22e   :  { %234 = vrcp.f32 %v166_v62  ;;  %v186_v3 = vmin.f32 %v185_v2, %v166_v62 }
 0x238   :  { %v235_v4 = vpop.eup %234 }
 0x239   :  { %v188_v5 = vmul.f32 %v235_v4, %v186_v3 }
 0x23b   :  { %v189_v7 = vsub.f32 1.0, %v188_v5 }
 0x23d   :  { %v193_v9 = vmul.f32 %v192_v6, %v189_v7 }
 0x23f   :  { %v195_v10 = vadd.f32 %v194_v8, %v193_v9 }
 0x241   :  { %197 = vst.msk [vmem:[#allocation5] sm:$0x1] %vm196_vm7, %v195_v10 }
 0x242   :  { %259 = shalt.err (!%p256_p9)
}
 0x243   :  { %s260_s28 = scalar_lea.hbm %s330_s3, 16 }
 0x244   :  { %p261_p10 = scmp.ne.s32.totalorder %s330_s3, %s260_s28  ;;  %p264_p11 = scmp.lt.u32.totalorder %s260_s28, %s330_s3 }
 0x246   :  { %p266_p12 = pnand %p264_p11, %p261_p10 }
 0x248   :  { %269 = shalt.err (!%p266_p12)
}
 0x249   :  { %207 = dma.vmem_to_hbm [thread:$0]  %s205_s23, 16, %s330_s3, [#allocation3]  }
 0x24a   :  { %272 = dma.done.wait [#allocation3], 16  }
 0x24b   :  { %273 = vsyncadd [#allocation3], 4294967280 }
 0x24c   :  { %211 = vsyncpa [#allocation3], 1 }
 0x24d   :  { %212 = vsyncpa [#allocation4], 1 }

</bundles_post_ra>
